<compile_context>
chip_gen: v7x
topology: tpu7x:2x2x1
jax: 0.10.0
libtpu: 0.0.40
codegen_flags: <defaults>
</compile_context>

<pallas_src>
import functools

import jax
import jax.numpy as jnp
from jax.experimental import pallas as pl
from jax.experimental.pallas import tpu as pltpu


# ---------------------------------------------------------------------------
# Kernels
# ---------------------------------------------------------------------------
def _space_to_depth_kernel(x_ref, o_ref, *, bl, d, W, new_w, wc):
    # x_ref: (1, d, th, bl*W)   view of NCHW input rows; lane q = i*W + nw*bl + j
    # o_ref: (1, bl*bl*d, th, new_w)  NCHW output block; channel = (i*bl + j)*d + c
    th = x_ref.shape[2]
    n_chunks = new_w // wc

    # 0/1 selection matrices: sel[j][p, m] = 1 iff p == m*bl + j   (wc*bl, wc)
    p_idx = jax.lax.broadcasted_iota(jnp.int32, (wc * bl, wc), 0)
    m_idx = jax.lax.broadcasted_iota(jnp.int32, (wc * bl, wc), 1)
    sel = [(p_idx == m_idx * bl + j).astype(x_ref.dtype) for j in range(bl)]

    for i in range(bl):                      # H-phase
        for k in range(n_chunks):            # 128-wide output-lane chunks
            lo = i * W + k * wc * bl
            lhs = x_ref[0, :, :, lo:lo + wc * bl].reshape(d * th, wc * bl)
            for j in range(bl):              # W-phase via MXU selection
                res = jnp.dot(lhs, sel[j],
                              preferred_element_type=jnp.float32,
                              precision=jax.lax.Precision.HIGHEST)
                c0 = (i * bl + j) * d
                o_ref[0, c0:c0 + d, :, k * wc:(k + 1) * wc] = (
                    res.astype(o_ref.dtype).reshape(d, th, wc))


def _depth_to_space_kernel(y_ref, o_ref, *, bl, dc, w, wc):
    # y_ref: (1, bl*bl*dc, th, w)   NCHW input block; channel = (i*bl + j)*dc + c
    # o_ref: (1, dc, th, bl*bl*w)   view of NCHW output; lane q = i*(w*bl) + nw*bl + j
    th = y_ref.shape[2]
    Wo = w * bl
    n_chunks = w // wc

    # sel[j][m, p] = 1 iff p == m*bl + j   (wc, wc*bl)
    m_idx = jax.lax.broadcasted_iota(jnp.int32, (wc, wc * bl), 0)
    p_idx = jax.lax.broadcasted_iota(jnp.int32, (wc, wc * bl), 1)
    sel = [(p_idx == m_idx * bl + j).astype(y_ref.dtype) for j in range(bl)]

    for i in range(bl):                      # H-phase
        for k in range(n_chunks):            # lane chunks of the interleaved output
            acc = None
            for j in range(bl):              # interleave W-phases via MXU
                c0 = (i * bl + j) * dc
                lhs = y_ref[0, c0:c0 + dc, :, k * wc:(k + 1) * wc]
                lhs = lhs.reshape(dc * th, wc)
                part = jnp.dot(lhs, sel[j],
                               preferred_element_type=jnp.float32,
                               precision=jax.lax.Precision.HIGHEST)
                acc = part if acc is None else acc + part   # disjoint lanes -> exact
            q0 = i * Wo + k * wc * bl
            o_ref[0, :, :, q0:q0 + wc * bl] = (
                acc.astype(o_ref.dtype).reshape(dc, th, wc * bl))


# ---------------------------------------------------------------------------
# Tiling helpers
# ---------------------------------------------------------------------------
def _sublane_multiple(dtype):
    return {4: 8, 2: 16, 1: 32}.get(jnp.dtype(dtype).itemsize, 8)


def _pick_h_tile(n_rows, bytes_per_row, ch_rows, mult):
    """Largest tile t with t % mult == 0 and n_rows % t == 0, bounded so each
    block stays ~<=1 MiB and the matmul M dim (ch_rows * t) stays modest;
    otherwise the full dim (always BlockSpec-legal)."""
    target = max(mult, min((1 << 20) // max(1, bytes_per_row),
                           max(1, 128 // max(1, ch_rows))))
    if n_rows <= target:
        return n_rows
    t = (min(target, n_rows) // mult) * mult
    while t >= mult:
        if n_rows % t == 0:
            return t
        t -= mult
    return n_rows


def _pick_w_chunk(n):
    """Largest divisor of n that is <= 128 (bounds selection-matmul FLOPs/elem)."""
    for c in range(min(n, 128), 0, -1):
        if n % c == 0:
            return c
    return n


# ---------------------------------------------------------------------------
# Wrappers (NCHW in / NCHW out, exactly matching the PyTorch module)
# ---------------------------------------------------------------------------
@functools.partial(jax.jit, static_argnames=("block_size",))
def psi_forward(x, *, block_size):
    """psi.forward(x, rev=False): (bs, d, H, W) -> (bs, d*bl*bl, H//bl, W//bl)."""
    bs, d, H, W = x.shape
    bl = block_size
    if bl == 1:
        return x
    assert H % bl == 0 and W % bl == 0, "H and W must be divisible by block_size"
    new_h, new_w = H // bl, W // bl

    xv = x.reshape(bs, d, new_h, bl * W)          # free contiguous view (stays NCHW)
    esize = jnp.dtype(x.dtype).itemsize
    mult = _sublane_multiple(x.dtype)
    th = _pick_h_tile(new_h, d * bl * W * esize, d, mult)
    wc = _pick_w_chunk(new_w)

    kernel = functools.partial(_space_to_depth_kernel,
                               bl=bl, d=d, W=W, new_w=new_w, wc=wc)
    return pl.pallas_call(
        kernel,
        out_shape=jax.ShapeDtypeStruct((bs, bl * bl * d, new_h, new_w), x.dtype),
        grid=(bs, new_h // th),
        in_specs=[pl.BlockSpec((1, d, th, bl * W), lambda b, hq: (b, 0, hq, 0))],
        out_specs=pl.BlockSpec((1, bl * bl * d, th, new_w),
                               lambda b, hq: (b, 0, hq, 0)),
        compiler_params=pltpu.CompilerParams(
            dimension_semantics=("parallel", "parallel")),
    )(xv)


@functools.partial(jax.jit, static_argnames=("block_size",))
def psi_inverse(y, *, block_size):
    """psi.forward(y, rev=True): (bs, d, h, w) -> (bs, d//bl^2, h*bl, w*bl)."""
    bs, dd, h, w = y.shape
    bl = block_size
    if bl == 1:
        return y
    assert dd % (bl * bl) == 0, "channels must be divisible by block_size**2"
    dc = dd // (bl * bl)

    esize = jnp.dtype(y.dtype).itemsize
    mult = _sublane_multiple(y.dtype)
    th = _pick_h_tile(h, dd * w * esize, dc, mult)
    wc = _pick_w_chunk(w)

    kernel = functools.partial(_depth_to_space_kernel, bl=bl, dc=dc, w=w, wc=wc)
    out = pl.pallas_call(
        kernel,
        out_shape=jax.ShapeDtypeStruct((bs, dc, h, bl * bl * w), y.dtype),
        grid=(bs, h // th),
        in_specs=[pl.BlockSpec((1, dd, th, w), lambda b, hq: (b, 0, hq, 0))],
        out_specs=pl.BlockSpec((1, dc, th, bl * bl * w),
                               lambda b, hq: (b, 0, hq, 0)),
        compiler_params=pltpu.CompilerParams(
            dimension_semantics=("parallel", "parallel")),
    )(y)
    return out.reshape(bs, dc, h * bl, w * bl)    # free contiguous view


class PsiPallas:
    """Mirror of the PyTorch `psi` module (parameter-free permutation)."""

    def __init__(self, block_size):
        self.block_size = block_size
        self.block_size_sq = block_size * block_size

    def inverse(self, inpt):
        return psi_inverse(inpt, block_size=self.block_size)

    def forward(self, inpt, rev=False, calc_jac=False):
        if not rev:
            out = psi_forward(inpt, block_size=self.block_size)
        else:
            out = psi_inverse(inpt, block_size=self.block_size)
        if calc_jac:
            return (out, 1)   # Jacobian determinant of a permutation is 1
        return out


# ---------------------------------------------------------------------------
# Pure-JAX references (literal transcription of the torch code)
# ---------------------------------------------------------------------------
def _psi_forward_ref(x, bl):
    bs, d, H, W = x.shape
    nh, nw = H // bl, W // bl
    return (x.reshape(bs, d, nh, bl, nw, bl)
             .transpose(0, 3, 5, 1, 2, 4)
             .reshape(bs, d * bl * bl, nh, nw))


def _psi_inverse_ref(y, bl):
    bs, dd, h, w = y.shape
    dc = dd // (bl * bl)
    return (y.reshape(bs, bl, bl, dc, h, w)
             .transpose(0, 3, 4, 1, 5, 2)
             .reshape(bs, dc, h * bl, w * bl))


if __name__ == "__main__":
    block_size = 2
    psi = PsiPallas(block_size)

    def _exact(a, b):
        return bool(jnp.array_equal(a, b))

    # Case 1: the module's typical small shape (bs, d, H, W) = (2, 4, 16, 16).
    # Test values are bf16-representable so the equality check is exact no matter
    # how the MXU decomposes the f32 selection matmul (the kernel additionally
    # requests Precision.HIGHEST so arbitrary f32 data is handled exactly).
    x = jax.random.normal(jax.random.PRNGKey(0), (2, 4, 16, 16), dtype=jnp.float32)
    x = x.astype(jnp.bfloat16).astype(jnp.float32)

    out = jax.block_until_ready(psi.forward(x))
    ref = _psi_forward_ref(x, block_size)
    assert out.shape == (2, 4 * block_size ** 2, 8, 8)
    assert _exact(out, ref), "forward mismatch vs reference"

    out_j, jac = psi.forward(x, calc_jac=True)
    assert jac == 1 and _exact(out_j, ref)

    back = jax.block_until_ready(psi.forward(out, rev=True))
    assert back.shape == x.shape
    assert _exact(back, x), "rev path did not invert forward"
    assert _exact(back, _psi_inverse_ref(out, block_size)), "rev mismatch vs reference"

    # Case 2: a lane-dense, more TPU-realistic shape (exercises H-tiling, W chunks).
    x2 = jax.random.normal(jax.random.PRNGKey(1), (1, 3, 128, 128), dtype=jnp.float32)
    x2 = x2.astype(jnp.bfloat16).astype(jnp.float32)
    out2 = jax.block_until_ready(psi.forward(x2))
    assert _exact(out2, _psi_forward_ref(x2, block_size)), "forward mismatch (case 2)"
    back2 = jax.block_until_ready(psi.forward(out2, rev=True))
    assert _exact(back2, x2), "inverse mismatch (case 2)"

    print("KERNEL_OK")
</pallas_src>

<mosaic_0001>
module attributes {stable_mosaic.version = 11 : i64} {
  func.func @_space_to_depth_kernel(%arg0: i32, %arg1: i32, %arg2: memref<1x4x8x32xf32, #tpu.memory_space<vmem>>, %arg3: memref<1x16x8x8xf32, #tpu.memory_space<vmem>>) attributes {dimension_semantics = [#tpu.dimension_semantics<parallel>, #tpu.dimension_semantics<parallel>], iteration_bounds = array<i64: 2, 1>, scalar_prefetch = 0 : i64, scratch_operands = 0 : i64, tpu.core_type = #tpu.core_type<tc>, window_params = [{transform_indices = @transform_0, window_bounds = array<i64: 1, 4, 8, 32>}, {transform_indices = @transform_1, window_bounds = array<i64: 1, 16, 8, 8>}]} {
    %0 = tpu.iota {dimensions = array<i32: 0>} : vector<16x8xi32>
    %1 = tpu.iota {dimensions = array<i32: 1>} : vector<16x8xi32>
    %c2_i32 = arith.constant 2 : i32
    %2 = vector.broadcast %c2_i32 : i32 to vector<16x8xi32>
    %3 = arith.muli %1, %2 : vector<16x8xi32>
    %c0_i32 = arith.constant 0 : i32
    %4 = vector.broadcast %c0_i32 : i32 to vector<16x8xi32>
    %5 = arith.addi %3, %4 : vector<16x8xi32>
    %6 = arith.cmpi eq, %0, %5 : vector<16x8xi32>
    %7 = arith.extui %6 : vector<16x8xi1> to vector<16x8xi32>
    %8 = arith.sitofp %7 : vector<16x8xi32> to vector<16x8xf32>
    %c2_i32_0 = arith.constant 2 : i32
    %9 = vector.broadcast %c2_i32_0 : i32 to vector<16x8xi32>
    %10 = arith.muli %1, %9 : vector<16x8xi32>
    %c1_i32 = arith.constant 1 : i32
    %11 = vector.broadcast %c1_i32 : i32 to vector<16x8xi32>
    %12 = arith.addi %10, %11 : vector<16x8xi32>
    %13 = arith.cmpi eq, %0, %12 : vector<16x8xi32>
    %14 = arith.extui %13 : vector<16x8xi1> to vector<16x8xi32>
    %15 = arith.sitofp %14 : vector<16x8xi32> to vector<16x8xf32>
    %c0 = arith.constant 0 : index
    %c0_1 = arith.constant 0 : index
    %c0_2 = arith.constant 0 : index
    %c0_3 = arith.constant 0 : index
    %16 = vector.load %arg2[%c0, %c0_1, %c0_2, %c0_3] : memref<1x4x8x32xf32, #tpu.memory_space<vmem>>, vector<1x4x8x16xf32>
    %17 = vector.shape_cast %16 : vector<1x4x8x16xf32> to vector<4x8x16xf32>
    %18 = vector.shape_cast %17 : vector<4x8x16xf32> to vector<32x16xf32>
    %cst = arith.constant dense<0.000000e+00> : vector<32x8xf32>
    %19 = tpu.matmul %18, %8, %cst {dimension_numbers = #tpu.dot_dimension_numbers<[1], [0], [0], [1], [0, 0, 1, 1], [], []>, precision = #tpu.contract_precision<fp32>} : vector<32x16xf32>, vector<16x8xf32>, vector<32x8xf32> -> vector<32x8xf32>
    %20 = vector.shape_cast %19 : vector<32x8xf32> to vector<4x8x8xf32>
    %c0_4 = arith.constant 0 : index
    %c0_5 = arith.constant 0 : index
    %c0_6 = arith.constant 0 : index
    %c0_7 = arith.constant 0 : index
    %21 = vector.load %arg3[%c0_4, %c0_5, %c0_6, %c0_7] : memref<1x16x8x8xf32, #tpu.memory_space<vmem>>, vector<1x4x8x8xf32>
    %22 = vector.shape_cast %21 : vector<1x4x8x8xf32> to vector<4x8x8xf32>
    %23 = vector.shape_cast %20 : vector<4x8x8xf32> to vector<1x4x8x8xf32>
    tpu.vector_store %arg3[%c0_4, %c0_5, %c0_6, %c0_7], %23 {strides = array<i32>} : memref<1x16x8x8xf32, #tpu.memory_space<vmem>>, vector<1x4x8x8xf32>,
    %cst_8 = arith.constant dense<0.000000e+00> : vector<32x8xf32>
    %24 = tpu.matmul %18, %15, %cst_8 {dimension_numbers = #tpu.dot_dimension_numbers<[1], [0], [0], [1], [0, 0, 1, 1], [], []>, precision = #tpu.contract_precision<fp32>} : vector<32x16xf32>, vector<16x8xf32>, vector<32x8xf32> -> vector<32x8xf32>
    %25 = vector.shape_cast %24 : vector<32x8xf32> to vector<4x8x8xf32>
    %c0_9 = arith.constant 0 : index
    %c4 = arith.constant 4 : index
    %c0_10 = arith.constant 0 : index
    %c0_11 = arith.constant 0 : index
    %26 = vector.load %arg3[%c0_9, %c4, %c0_10, %c0_11] : memref<1x16x8x8xf32, #tpu.memory_space<vmem>>, vector<1x4x8x8xf32>
    %27 = vector.shape_cast %26 : vector<1x4x8x8xf32> to vector<4x8x8xf32>
    %28 = vector.shape_cast %25 : vector<4x8x8xf32> to vector<1x4x8x8xf32>
    tpu.vector_store %arg3[%c0_9, %c4, %c0_10, %c0_11], %28 {strides = array<i32>} : memref<1x16x8x8xf32, #tpu.memory_space<vmem>>, vector<1x4x8x8xf32>,
    %c0_12 = arith.constant 0 : index
    %c0_13 = arith.constant 0 : index
    %c0_14 = arith.constant 0 : index
    %c16 = arith.constant 16 : index
    %29 = vector.load %arg2[%c0_12, %c0_13, %c0_14, %c16] : memref<1x4x8x32xf32, #tpu.memory_space<vmem>>, vector<1x4x8x16xf32>
    %30 = vector.shape_cast %29 : vector<1x4x8x16xf32> to vector<4x8x16xf32>
    %31 = vector.shape_cast %30 : vector<4x8x16xf32> to vector<32x16xf32>
    %cst_15 = arith.constant dense<0.000000e+00> : vector<32x8xf32>
    %32 = tpu.matmul %31, %8, %cst_15 {dimension_numbers = #tpu.dot_dimension_numbers<[1], [0], [0], [1], [0, 0, 1, 1], [], []>, precision = #tpu.contract_precision<fp32>} : vector<32x16xf32>, vector<16x8xf32>, vector<32x8xf32> -> vector<32x8xf32>
    %33 = vector.shape_cast %32 : vector<32x8xf32> to vector<4x8x8xf32>
    %c0_16 = arith.constant 0 : index
    %c8 = arith.constant 8 : index
    %c0_17 = arith.constant 0 : index
    %c0_18 = arith.constant 0 : index
    %34 = vector.load %arg3[%c0_16, %c8, %c0_17, %c0_18] : memref<1x16x8x8xf32, #tpu.memory_space<vmem>>, vector<1x4x8x8xf32>
    %35 = vector.shape_cast %34 : vector<1x4x8x8xf32> to vector<4x8x8xf32>
    %36 = vector.shape_cast %33 : vector<4x8x8xf32> to vector<1x4x8x8xf32>
    tpu.vector_store %arg3[%c0_16, %c8, %c0_17, %c0_18], %36 {strides = array<i32>} : memref<1x16x8x8xf32, #tpu.memory_space<vmem>>, vector<1x4x8x8xf32>,
    %cst_19 = arith.constant dense<0.000000e+00> : vector<32x8xf32>
    %37 = tpu.matmul %31, %15, %cst_19 {dimension_numbers = #tpu.dot_dimension_numbers<[1], [0], [0], [1], [0, 0, 1, 1], [], []>, precision = #tpu.contract_precision<fp32>} : vector<32x16xf32>, vector<16x8xf32>, vector<32x8xf32> -> vector<32x8xf32>
    %38 = vector.shape_cast %37 : vector<32x8xf32> to vector<4x8x8xf32>
    %c0_20 = arith.constant 0 : index
    %c12 = arith.constant 12 : index
    %c0_21 = arith.constant 0 : index
    %c0_22 = arith.constant 0 : index
    %39 = vector.load %arg3[%c0_20, %c12, %c0_21, %c0_22] : memref<1x16x8x8xf32, #tpu.memory_space<vmem>>, vector<1x4x8x8xf32>
    %40 = vector.shape_cast %39 : vector<1x4x8x8xf32> to vector<4x8x8xf32>
    %41 = vector.shape_cast %38 : vector<4x8x8xf32> to vector<1x4x8x8xf32>
    tpu.vector_store %arg3[%c0_20, %c12, %c0_21, %c0_22], %41 {strides = array<i32>} : memref<1x16x8x8xf32, #tpu.memory_space<vmem>>, vector<1x4x8x8xf32>,
    return
  }
  func.func @transform_0(%arg0: i32, %arg1: i32) -> (i32, i32, i32, i32) {
    %c0_i32 = arith.constant 0 : i32
    %c0_i32_0 = arith.constant 0 : i32
    %c0_i32_1 = arith.constant 0 : i32
    return %arg0, %c0_i32, %arg1, %c0_i32_0 : i32, i32, i32, i32
  }
  func.func @transform_1(%arg0: i32, %arg1: i32) -> (i32, i32, i32, i32) {
    %c0_i32 = arith.constant 0 : i32
    %c0_i32_0 = arith.constant 0 : i32
    %c0_i32_1 = arith.constant 0 : i32
    return %arg0, %c0_i32, %arg1, %c0_i32_0 : i32, i32, i32, i32
  }
}

</mosaic_0001>

<bundles_post_ra>
// kernel: psi_forward.1
= control target key start
LH: loop header
LB: loop body
LE: loop exit
PB: predicated region body
PF: predicated region fallthrough
CT: control target
= control target key end

     0   :  { %s3340_s6 = smov 0   ;;  %s3342_s7 = smov 0   ;;  %s3665_s0 = inlined_call_operand.vmem [shape: f32[2,4,8,32], index: 0, kind: input, shape index: {}]   ;;  %s3666_s1 = inlined_call_operand.vmem [shape: f32[2,16,8,8], index: 1, kind: output, shape index: {}]  }
   0x1   :  { %s3344_s8 = smov 0  }
   0x2 LB: > { %s23_s9 = sadd.s32 1, %s3321_s7  ;;  %p2667_p0 = scmp.ge.s32.totalorder %s3325_s8, 1  ;;  %s3325_s8 = sphi %s3344_s8, %s11_s8   ;;  %s3321_s7 = sphi %s3342_s7, %s3672_s7   ;;  %s3317_s6 = sphi %s3340_s6, %s3671_s6  }
   0x3   : > { %p25_p1 = scmp.ge.s32.totalorder %s23_s9, 2  ;;  %p106_p2 = scmp.lt.s32.totalorder %s3325_s8, 3 }
   0x5   : > { %s3674_s9 = smov (%p25_p1, %s23_s9), 0  ;;  %p107_p3 = pnand %p2667_p0, %p106_p2 }
   0x6   : > { %p132_p4 = scmp.lt.s32.totalorder (!%p107_p3), %s3317_s6, 1  ;;  %v148_v0 = vlaneseq (!%p107_p3)  ;;  %vm171_vm0 = vcmask (!%p107_p3), 130048   ;;  %s3327_s14 = smov (!%p107_p3), 112   ;;  %v3328_v14 = vmov (!%p107_p3), 0.0   ;;  %v3329_v16 = vmov (!%p107_p3), 1.0|1.0  }
   0x7   : > { %110 = sbr.rel (%p107_p3) target bundleno = 406 (0x196), region = 24  ;;  %vm772_vm7 = vcmask (!%p107_p3), 64512  }
   0x8   : > { %v149_v1 = vshrl.u32 (!%p107_p3), %v148_v0, 7  ;;  %v152_v2 = vand.u32 (!%p107_p3), 127, %v148_v0 }
   0xa   : > { %v150_v3 = vadd.s32 (!%p107_p3), 8, %v149_v1  ;;  %v153_v4 = vmul.u32 (!%p107_p3), 2, %v152_v2 }
   0xc   : > { %vm154_vm1 = vcmp.eq.s32.totalorder (!%p107_p3), %v149_v1, %v153_v4  ;;  %vm155_vm2 = vcmp.eq.s32.totalorder (!%p107_p3), %v150_v3, %v153_v4  ;;  %v160_v8 = vadd.s32 (!%p107_p3), 1, %v153_v4 }
   0xd   : > { %vm3365_vm3 = vmpackc.low (!%p107_p3), %vm155_vm2, %vm154_vm1  ;;  %v2672_v15 = vsel (!%p107_p3), %vm154_vm1, 1.0, %v3328_v14  ;;  %v2673_v23 = vsel (!%p107_p3), %vm155_vm2, 1.0, %v3328_v14 }
   0xe   : > { %s3676_s6 = smov (!%p132_p4, %s3317_s6), 1  ;;  %3101 = vmatprep.subr.msk.bf16.mxu0 %vm3365_vm3, %v3329_v16  ;;  %vm161_vm4 = vcmp.eq.s32.totalorder %v149_v1, %v160_v8  ;;  %vm162_vm5 = vcmp.eq.s32.totalorder %v150_v3, %v160_v8  ;;  %v3399_v25 = vsub.f32 %v2672_v15, %v2672_v15  ;;  %v3401_v26 = vsub.f32 %v2673_v23, %v2673_v23 }
   0xf   : > { %s2714_s10 = sshll.u32 %s3676_s6, 5  ;;  %vm3379_vm6 = vmpackc.low %vm162_vm5, %vm161_vm4  ;;  %3103 = vmatpush3.bf16.msk.msra.mxu0 %vm3365_vm3, %v3329_v16  ;;  %v2674_v27 = vsel %vm161_vm4, 1.0, %v3328_v14  ;;  %v2675_v31 = vsel %vm162_vm5, 1.0, %v3328_v14  ;;  %s2715_s15 = sshll.u32 %s3676_s6, 7 }
  0x10   : > { %s139_s13 = scalar_lea.vmem %s3665_s0, %s2714_s10  ;;  %3125 = vmatprep.subr.msk.bf16.mxu1 %vm3379_vm6, %v3329_v16  ;;  %v294_v33 = vand.u32 4294901760, %v3399_v25  ;;  %v301_v34 = vand.u32 4294901760, %v3401_v26  ;;  %v886_v35 = vsub.f32 %v2674_v27, %v2674_v27  ;;  %v893_v39 = vsub.f32 %v2675_v31, %v2675_v31  ;;  %s3622_s18 = scalar_lea.vmem %s3666_s1, %s2715_s15 }
  0x11   : > { %v1372_v5 = vld [vmem:[%s139_s13 + $0x10] sm:$0xff]  ;;  %v1370_v6 = vld [vmem:[%s139_s13] sm:$0xff]  ;;  %v1373_v7 = vld [vmem:[%s139_s13 + $0x18] sm:$0xff]  ;;  %3127 = vmatpush3.bf16.msk.msra.mxu1 %vm3379_vm6, %v3329_v16  ;;  %v3448_v60 = vpack.c.bf16 %v3401_v26, %v3399_v25 }
  0x12   : > { %1382 = vrot.lane.b32.xlu1 %v1372_v5, %s3327_s14  ;;  %1378 = vrot.lane.b32.xlu0 %v1370_v6, %s3327_s14  ;;  %v1371_v9 = vld [vmem:[%s139_s13 + $0x8] sm:$0xff]  ;;  %v173_v11 = vsel %vm171_vm0, %v1370_v6, 0  ;;  %v179_v12 = vsel %vm171_vm0, %v1372_v5, 0  ;;  %v182_v13 = vsel %vm171_vm0, %v1373_v7, 0  ;;  %v295_v41 = vsub.f32 %v3399_v25, %v294_v33 }
  0x13   : > { %v3375_v17 = vand.u32 4294901760, %v173_v11  ;;  %v176_v18 = vsel %vm171_vm0, %v1371_v9, 0  ;;  %v3388_v21 = vand.u32 4294901760, %v179_v12  ;;  %v3390_v22 = vand.u32 4294901760, %v182_v13 }
  0x14   : > { %v3386_v20 = vand.u32 4294901760, %v176_v18  ;;  %v302_v42 = vsub.f32 %v3401_v26, %v301_v34  ;;  %v887_v43 = vand.u32 4294901760, %v886_v35  ;;  %v894_v47 = vand.u32 4294901760, %v893_v39 }
  0x15   : > { %v3397_v24 = vsub.f32 %v173_v11, %v3375_v17  ;;  %v3407_v29 = vsub.f32 %v179_v12, %v3388_v21  ;;  %v3410_v30 = vsub.f32 %v182_v13, %v3390_v22  ;;  %v296_v49 = vand.u32 4294901760, %v295_v41 }
  0x16   : > { %1384 = vrot.lane.b32.xlu1 %v1373_v7, %s3327_s14  ;;  %1380 = vrot.lane.b32.xlu0 %v1371_v9, %s3327_s14  ;;  %v3404_v28 = vsub.f32 %v176_v18, %v3386_v20  ;;  %v303_v50 = vand.u32 4294901760, %v302_v42  ;;  %v888_v51 = vsub.f32 %v886_v35, %v887_v43  ;;  %v895_v54 = vsub.f32 %v893_v39, %v894_v47 }
  0x17   : > { %v3417_v32 = vand.u32 4294901760, %v3397_v24  ;;  %v3425_v37 = vand.u32 4294901760, %v3407_v29  ;;  %v3428_v38 = vand.u32 4294901760, %v3410_v30  ;;  %v3450_v61 = vpack.c.bf16 %v893_v39, %v886_v35 }
  0x18   : > { %v3422_v36 = vand.u32 4294901760, %v3404_v28  ;;  %v3440_v55 = vpack.c.bf16 %v303_v50, %v296_v49  ;;  %v889_v56 = vand.u32 4294901760, %v888_v51  ;;  %v896_v58 = vand.u32 4294901760, %v895_v54 }
  0x19   : > { %v254_v40 = vsub.f32 %v3397_v24, %v3417_v32  ;;  %v274_v45 = vsub.f32 %v3407_v29, %v3425_v37  ;;  %v284_v46 = vsub.f32 %v3410_v30, %v3428_v38  ;;  %v3474_v62 = vpack.c.bf16 %v301_v34, %v294_v33 }
  0x1a   : > { %v264_v44 = vsub.f32 %v3404_v28, %v3422_v36  ;;  %3105 = vmatprep.subr.bf16.mxu0 %v3440_v55  ;;  %v3443_v59 = vpack.c.bf16 %v896_v58, %v889_v56  ;;  %v3477_v63 = vpack.c.bf16 %v894_v47, %v887_v43 }
  0x1b   : > { %v255_v48 = vand.u32 4294901760, %v254_v40  ;;  %v275_v53 = vand.u32 4294901760, %v274_v45  ;;  %v285_v57 = vand.u32 4294901760, %v284_v46 }
  0x1c   : > { %v265_v52 = vand.u32 4294901760, %v264_v44  ;;  %3129 = vmatprep.subr.bf16.mxu1 %v3443_v59 }
  0x1d   : > { %2864 = vmatprep.mubr.f32.mxu0 %v255_v48  ;;  %2924 = vmatprep.mubr.f32.mxu1 %v255_v48 }
  0x1e   : > { %2865 = vmatmul.mubr.f32.vlgmr.msra.gmra.mrb[0].mxu0 %v265_v52  ;;  %2925 = vmatmul.mubr.f32.vlgmr.msra.gmra.mrb[0].mxu1 %v265_v52 }
  0x1f   : > { %2867 = vmatprep.mubr.f32.mxu0 %v275_v53  ;;  %2927 = vmatprep.mubr.f32.mxu1 %v275_v53 }
  0x20   : > { %3107 = vmatpush3.bf16.msra.mxu0 %v3440_v55  ;;  %3131 = vmatpush3.bf16.msra.mxu1 %v3443_v59 }
  0x21   : > { %3109 = vmatprep.subr.bf16.mxu0 %v3448_v60  ;;  %3133 = vmatprep.subr.bf16.mxu1 %v3450_v61 }
  0x22   : > { %2868 = vmatmul.mubr.f32.gmra.mrb[2].mxu0 %v285_v57  ;;  %2928 = vmatmul.mubr.f32.gmra.mrb[2].mxu1 %v285_v57 }
  0x23   : > { %2874 = vmatprep.mubr.f32.mxu0 %v3375_v17  ;;  %2934 = vmatprep.mubr.f32.mxu1 %v3375_v17 }
  0x26   : > { %2875 = vmatmul.mubr.f32.vlgmr.msra.gmra.mrb[0].mxu0 %v3386_v20  ;;  %2935 = vmatmul.mubr.f32.vlgmr.msra.gmra.mrb[0].mxu1 %v3386_v20 }
  0x27   : > { %2877 = vmatprep.mubr.f32.mxu0 %v3388_v21  ;;  %2937 = vmatprep.mubr.f32.mxu1 %v3388_v21 }
  0x28   : > { %3111 = vmatpush3.bf16.msra.mxu0 %v3448_v60  ;;  %3135 = vmatpush3.bf16.msra.mxu1 %v3450_v61 }
  0x29   : > { %3113 = vmatprep.subr.msk.bf16.mxu0 %vm3365_vm3, %v3329_v16  ;;  %3137 = vmatprep.subr.msk.bf16.mxu1 %vm3379_vm6, %v3329_v16 }
  0x2a   : > { %2878 = vmatmul.mubr.f32.gmra.mrb[2].mxu0 %v3390_v22  ;;  %2938 = vmatmul.mubr.f32.gmra.mrb[2].mxu1 %v3390_v22 }
  0x2b   : > { %2884 = vmatprep.mubr.f32.mxu0 %v3397_v24  ;;  %2944 = vmatprep.mubr.f32.mxu1 %v3397_v24 }
  0x2e   : > { %2885 = vmatmul.mubr.f32.vlgmr.msra.gmra.mrb[0].mxu0 %v3404_v28  ;;  %2945 = vmatmul.mubr.f32.vlgmr.msra.gmra.mrb[0].mxu1 %v3404_v28 }
  0x2f   : > { %2887 = vmatprep.mubr.f32.mxu0 %v3407_v29  ;;  %2947 = vmatprep.mubr.f32.mxu1 %v3407_v29 }
  0x30   : > { %3115 = vmatpush3.bf16.msk.msra.mxu0 %vm3365_vm3, %v3329_v16  ;;  %3139 = vmatpush3.bf16.msk.msra.mxu1 %vm3379_vm6, %v3329_v16 }
  0x31   : > { %3117 = vmatprep.subr.bf16.mxu0 %v3474_v62  ;;  %3141 = vmatprep.subr.bf16.mxu1 %v3477_v63 }
  0x32   : > { %2888 = vmatmul.mubr.f32.gmra.mrb[2].mxu0 %v3410_v30  ;;  %2948 = vmatmul.mubr.f32.gmra.mrb[2].mxu1 %v3410_v30 }
  0x33   : > { %2894 = vmatprep.mubr.f32.mxu0 %v3417_v32  ;;  %2954 = vmatprep.mubr.f32.mxu1 %v3417_v32 }
  0x36   : > { %2895 = vmatmul.mubr.f32.vlgmr.msra.gmra.mrb[0].mxu0 %v3422_v36  ;;  %2955 = vmatmul.mubr.f32.vlgmr.msra.gmra.mrb[0].mxu1 %v3422_v36 }
  0x37   : > { %2897 = vmatprep.mubr.f32.mxu0 %v3425_v37  ;;  %2957 = vmatprep.mubr.f32.mxu1 %v3425_v37 }
  0x38   : > { %3119 = vmatpush3.bf16.msra.mxu0 %v3474_v62  ;;  %3143 = vmatpush3.bf16.msra.mxu1 %v3477_v63 }
  0x39   : > { %3121 = vmatprep.subr.msk.bf16.mxu0 %vm3365_vm3, %v3329_v16  ;;  %3145 = vmatprep.subr.msk.bf16.mxu1 %vm3379_vm6, %v3329_v16 }
  0x3a   : > { %2898 = vmatmul.mubr.f32.gmra.mrb[2].mxu0 %v3428_v38  ;;  %2958 = vmatmul.mubr.f32.gmra.mrb[2].mxu1 %v3428_v38 }
  0x3b   : > { %2904 = vmatprep.mubr.f32.mxu0 %v3375_v17  ;;  %2964 = vmatprep.mubr.f32.mxu1 %v3375_v17 }
  0x3e   : > { %2905 = vmatmul.mubr.f32.vlgmr.msra.gmra.mrb[0].mxu0 %v3386_v20  ;;  %2965 = vmatmul.mubr.f32.vlgmr.msra.gmra.mrb[0].mxu1 %v3386_v20 }
  0x3f   : > { %2907 = vmatprep.mubr.f32.mxu0 %v3388_v21  ;;  %2967 = vmatprep.mubr.f32.mxu1 %v3388_v21 }
  0x40   : > { %3123 = vmatpush3.bf16.msk.msra.mxu0 %vm3365_vm3, %v3329_v16  ;;  %3147 = vmatpush3.bf16.msk.msra.mxu1 %vm3379_vm6, %v3329_v16 }
  0x41   : > { %3149 = vmatprep.subr.msk.bf16.mxu0 %vm3365_vm3, %v3329_v16  ;;  %3173 = vmatprep.subr.msk.bf16.mxu1 %vm3379_vm6, %v3329_v16 }
  0x42   : > { %2908 = vmatmul.mubr.f32.gmra.mrb[2].mxu0 %v3390_v22  ;;  %2968 = vmatmul.mubr.f32.gmra.mrb[2].mxu1 %v3390_v22 }
  0x43   : > { %2914 = vmatprep.mubr.f32.mxu0 %v3375_v17  ;;  %2974 = vmatprep.mubr.f32.mxu1 %v3375_v17 }
  0x46   : > { %2915 = vmatmul.mubr.f32.vlgmr.msra.gmra.mrb[0].mxu0 %v3386_v20  ;;  %2975 = vmatmul.mubr.f32.vlgmr.msra.gmra.mrb[0].mxu1 %v3386_v20 }
  0x47   : > { %2917 = vmatprep.mubr.f32.mxu0 %v3388_v21  ;;  %2977 = vmatprep.mubr.f32.mxu1 %v3388_v21 }
  0x48   : > { %3151 = vmatpush3.bf16.msk.msra.mxu0 %vm3365_vm3, %v3329_v16  ;;  %3175 = vmatpush3.bf16.msk.msra.mxu1 %vm3379_vm6, %v3329_v16 }
  0x49   : > { %3153 = vmatprep.subr.bf16.mxu0 %v3440_v55  ;;  %3177 = vmatprep.subr.bf16.mxu1 %v3443_v59 }
  0x4a   : > { %2918 = vmatmul.mubr.f32.gmra.mrb[2].mxu0 %v3390_v22  ;;  %2978 = vmatmul.mubr.f32.gmra.mrb[2].mxu1 %v3390_v22 }
  0x84   : > { %v1383_v0 = vpop.permute.xlu1 %1382  ;;  %v1379_v1 = vpop.permute.xlu0 %1378 }
  0x85   : > { %v1390_v2 = vsel %vm171_vm0, %v1383_v0, 0  ;;  %v1386_v3 = vsel %vm171_vm0, %v1379_v1, 0 }
  0x86   : > { %v3546_v4 = vand.u32 4294901760, %v1390_v2  ;;  %v3548_v5 = vand.u32 4294901760, %v1386_v3 }
  0x88   : > { %v1482_v6 = vsub.f32 %v1390_v2, %v3546_v4  ;;  %v1462_v7 = vsub.f32 %v1386_v3, %v3548_v5  ;;  %v1385_v8 = vpop.permute.xlu1 %1384  ;;  %v1381_v9 = vpop.permute.xlu0 %1380 }
  0x89   : > { %v1392_v11 = vsel %vm171_vm0, %v1385_v8, 0  ;;  %v1388_v12 = vsel %vm171_vm0, %v1381_v9, 0 }
  0x8a   : > { %v3554_v13 = vand.u32 4294901760, %v1392_v11  ;;  %v3556_v14 = vand.u32 4294901760, %v1388_v12  ;;  %v1463_v15 = vand.u32 4294901760, %v1462_v7  ;;  %v1483_v21 = vand.u32 4294901760, %v1482_v6 }
  0x8c   : > { %v1492_v17 = vsub.f32 %v1392_v11, %v3554_v13  ;;  %v1472_v18 = vsub.f32 %v1388_v12, %v3556_v14  ;;  %v1464_v20 = vsub.f32 %v1462_v7, %v1463_v15  ;;  %v1484_v26 = vsub.f32 %v1482_v6, %v1483_v21 }
  0x8e   : > { %v1473_v22 = vand.u32 4294901760, %v1472_v18  ;;  %v1465_v23 = vand.u32 4294901760, %v1464_v20  ;;  %v1493_v24 = vand.u32 4294901760, %v1492_v17  ;;  %v1485_v29 = vand.u32 4294901760, %v1484_v26 }
  0x90   : > { %v1474_v25 = vsub.f32 %v1472_v18, %v1473_v22  ;;  %2984 = vmatprep.mubr.f32.mxu0 %v1465_v23  ;;  %3044 = vmatprep.mubr.f32.mxu1 %v1465_v23  ;;  %v1494_v28 = vsub.f32 %v1492_v17, %v1493_v24 }
  0x92   : > { %v1475_v27 = vand.u32 4294901760, %v1474_v25  ;;  %v1495_v30 = vand.u32 4294901760, %v1494_v28 }
  0x94   : > { %2985 = vmatmul.mubr.f32.vlgmr.msra.gmra.mrb[4].mxu0 %v1475_v27  ;;  %3045 = vmatmul.mubr.f32.vlgmr.msra.gmra.mrb[4].mxu1 %v1475_v27 }
  0x95   : > { %3155 = vmatpush3.bf16.msra.mxu0 %v3440_v55  ;;  %3179 = vmatpush3.bf16.msra.mxu1 %v3443_v59 }
  0x96   : > { %2987 = vmatprep.mubr.f32.mxu0 %v1485_v29  ;;  %3047 = vmatprep.mubr.f32.mxu1 %v1485_v29 }
  0x97   : > { %3157 = vmatprep.subr.bf16.mxu0 %v3448_v60  ;;  %3181 = vmatprep.subr.bf16.mxu1 %v3450_v61 }
  0x98   : > { %2988 = vmatmul.mubr.f32.gmra.mrb[6].mxu0 %v1495_v30  ;;  %3048 = vmatmul.mubr.f32.gmra.mrb[6].mxu1 %v1495_v30 }
  0x99   : > { %2994 = vmatprep.mubr.f32.mxu0 %v3548_v5  ;;  %3054 = vmatprep.mubr.f32.mxu1 %v3548_v5 }
  0x9c   : > { %2995 = vmatmul.mubr.f32.vlgmr.msra.gmra.mrb[4].mxu0 %v3556_v14  ;;  %3055 = vmatmul.mubr.f32.vlgmr.msra.gmra.mrb[4].mxu1 %v3556_v14 }
  0x9d   : > { %3159 = vmatpush3.bf16.msra.mxu0 %v3448_v60  ;;  %3183 = vmatpush3.bf16.msra.mxu1 %v3450_v61 }
  0x9e   : > { %2997 = vmatprep.mubr.f32.mxu0 %v3546_v4  ;;  %3057 = vmatprep.mubr.f32.mxu1 %v3546_v4 }
  0x9f   : > { %3161 = vmatprep.subr.msk.bf16.mxu0 %vm3365_vm3, %v3329_v16  ;;  %3185 = vmatprep.subr.msk.bf16.mxu1 %vm3379_vm6, %v3329_v16 }
  0xa0   : > { %2998 = vmatmul.mubr.f32.gmra.mrb[6].mxu0 %v3554_v13  ;;  %3058 = vmatmul.mubr.f32.gmra.mrb[6].mxu1 %v3554_v13 }
  0xa1   : > { %3004 = vmatprep.mubr.f32.mxu0 %v1462_v7  ;;  %3064 = vmatprep.mubr.f32.mxu1 %v1462_v7 }
  0xa4   : > { %3005 = vmatmul.mubr.f32.vlgmr.msra.gmra.mrb[4].mxu0 %v1472_v18  ;;  %3065 = vmatmul.mubr.f32.vlgmr.msra.gmra.mrb[4].mxu1 %v1472_v18 }
  0xa5   : > { %3163 = vmatpush3.bf16.msk.msra.mxu0 %vm3365_vm3, %v3329_v16  ;;  %3187 = vmatpush3.bf16.msk.msra.mxu1 %vm3379_vm6, %v3329_v16 }
  0xa6   : > { %3007 = vmatprep.mubr.f32.mxu0 %v1482_v6  ;;  %3067 = vmatprep.mubr.f32.mxu1 %v1482_v6 }
  0xa7   : > { %3165 = vmatprep.subr.bf16.mxu0 %v3474_v62  ;;  %3189 = vmatprep.subr.bf16.mxu1 %v3477_v63 }
  0xa8   : > { %3008 = vmatmul.mubr.f32.gmra.mrb[6].mxu0 %v1492_v17  ;;  %3068 = vmatmul.mubr.f32.gmra.mrb[6].mxu1 %v1492_v17 }
  0xa9   : > { %3014 = vmatprep.mubr.f32.mxu0 %v1463_v15  ;;  %3074 = vmatprep.mubr.f32.mxu1 %v1463_v15 }
  0xac   : > { %3015 = vmatmul.mubr.f32.vlgmr.msra.gmra.mrb[4].mxu0 %v1473_v22  ;;  %3075 = vmatmul.mubr.f32.vlgmr.msra.gmra.mrb[4].mxu1 %v1473_v22 }
  0xad   : > { %3167 = vmatpush3.bf16.msra.mxu0 %v3474_v62  ;;  %3191 = vmatpush3.bf16.msra.mxu1 %v3477_v63 }
  0xae   : > { %3017 = vmatprep.mubr.f32.mxu0 %v1483_v21  ;;  %3077 = vmatprep.mubr.f32.mxu1 %v1483_v21 }
  0xaf   : > { %3169 = vmatprep.subr.msk.bf16.mxu0 %vm3365_vm3, %v3329_v16  ;;  %3193 = vmatprep.subr.msk.bf16.mxu1 %vm3379_vm6, %v3329_v16 }
  0xb0   : > { %3018 = vmatmul.mubr.f32.gmra.mrb[6].mxu0 %v1493_v24  ;;  %3078 = vmatmul.mubr.f32.gmra.mrb[6].mxu1 %v1493_v24 }
  0xb1   : > { %3024 = vmatprep.mubr.f32.mxu0 %v3548_v5  ;;  %3084 = vmatprep.mubr.f32.mxu1 %v3548_v5 }
  0xb4   : > { %3025 = vmatmul.mubr.f32.vlgmr.msra.gmra.mrb[4].mxu0 %v3556_v14  ;;  %3085 = vmatmul.mubr.f32.vlgmr.msra.gmra.mrb[4].mxu1 %v3556_v14 }
  0xb5   : > { %3171 = vmatpush3.bf16.msk.msra.mxu0 %vm3365_vm3, %v3329_v16  ;;  %3195 = vmatpush3.bf16.msk.msra.mxu1 %vm3379_vm6, %v3329_v16 }
  0xb6   : > { %3027 = vmatprep.mubr.f32.mxu0 %v3546_v4  ;;  %3087 = vmatprep.mubr.f32.mxu1 %v3546_v4 }
  0xb8   : > { %3028 = vmatmul.mubr.f32.gmra.mrb[6].mxu0 %v3554_v13  ;;  %3088 = vmatmul.mubr.f32.gmra.mrb[6].mxu1 %v3554_v13 }
  0xb9   : > { %3034 = vmatprep.mubr.f32.mxu0 %v3548_v5  ;;  %3094 = vmatprep.mubr.f32.mxu1 %v3548_v5 }
  0xbc   : > { %3035 = vmatmul.mubr.f32.vlgmr.msra.gmra.mrb[4].mxu0 %v3556_v14  ;;  %3095 = vmatmul.mubr.f32.vlgmr.msra.gmra.mrb[4].mxu1 %v3556_v14 }
  0xbd   : > { %3037 = vmatprep.mubr.f32.mxu0 %v3546_v4  ;;  %3097 = vmatprep.mubr.f32.mxu1 %v3546_v4 }
  0xc0   : > { %3038 = vmatmul.mubr.f32.gmra.mrb[6].mxu0 %v3554_v13  ;;  %3098 = vmatmul.mubr.f32.gmra.mrb[6].mxu1 %v3554_v13 }
 0x119   : > { %v2916_v10 = vpop.f32.mrb[0].mxu0  ;;  %v2976_v16 = vpop.f32.mrb[0].mxu1 }
 0x11a   : > { %774 = vst.msk [vmem:[%s3622_s18 + $0x8] sm:$0xff] %vm772_vm7, %v2916_v10  ;;  %v750_v19 = vpop.f32.mrb[1].mxu0  ;;  %2689 = vst.msk [vmem:[%s3622_s18 + $0x28] sm:$0xff] %vm772_vm7, %v2976_v16  ;;  %v1343_v31 = vpop.f32.mrb[1].mxu1 }
 0x11b   : > { %773 = vst.msk [vmem:[%s3622_s18] sm:$0xff] %vm772_vm7, %v750_v19  ;;  %2688 = vst.msk [vmem:[%s3622_s18 + $0x20] sm:$0xff] %vm772_vm7, %v1343_v31 }
 0x11d   : > { %v2919_v32 = vpop.f32.mrb[2].mxu0  ;;  %v2979_v33 = vpop.f32.mrb[2].mxu1 }
 0x11e   : > { %776 = vst.msk [vmem:[%s3622_s18 + $0x18] sm:$0xff] %vm772_vm7, %v2919_v32  ;;  %v762_v34 = vpop.f32.mrb[3].mxu0  ;;  %2691 = vst.msk [vmem:[%s3622_s18 + $0x38] sm:$0xff] %vm772_vm7, %v2979_v33  ;;  %v1355_v35 = vpop.f32.mrb[3].mxu1 }
 0x11f   : > { %775 = vst.msk [vmem:[%s3622_s18 + $0x10] sm:$0xff] %vm772_vm7, %v762_v34  ;;  %2690 = vst.msk [vmem:[%s3622_s18 + $0x30] sm:$0xff] %vm772_vm7, %v1355_v35 }
 0x18f   : > { %v3036_v36 = vpop.f32.mrb[4].mxu0  ;;  %v3096_v37 = vpop.f32.mrb[4].mxu1 }
 0x190   : > { %2699 = vst.msk [vmem:[%s3622_s18 + $0x48] sm:$0xff] %vm772_vm7, %v3036_v36  ;;  %2709 = vst.msk [vmem:[%s3622_s18 + $0x68] sm:$0xff] %vm772_vm7, %v3096_v37  ;;  %v1960_v38 = vpop.f32.mrb[5].mxu0  ;;  %v2553_v39 = vpop.f32.mrb[5].mxu1 }
 0x191   : > { %2698 = vst.msk [vmem:[%s3622_s18 + $0x40] sm:$0xff] %vm772_vm7, %v1960_v38  ;;  %2708 = vst.msk [vmem:[%s3622_s18 + $0x60] sm:$0xff] %vm772_vm7, %v2553_v39 }
 0x193   : > { %v3039_v40 = vpop.f32.mrb[6].mxu0  ;;  %v3099_v41 = vpop.f32.mrb[6].mxu1 }
 0x194   : > { %2701 = vst.msk [vmem:[%s3622_s18 + $0x58] sm:$0xff] %vm772_vm7, %v3039_v40  ;;  %2711 = vst.msk [vmem:[%s3622_s18 + $0x78] sm:$0xff] %vm772_vm7, %v3099_v41  ;;  %v1972_v42 = vpop.f32.mrb[7].mxu0  ;;  %v2565_v43 = vpop.f32.mrb[7].mxu1 }
 0x195   : > { %2700 = vst.msk [vmem:[%s3622_s18 + $0x50] sm:$0xff] %vm772_vm7, %v1972_v42  ;;  %2710 = vst.msk [vmem:[%s3622_s18 + $0x70] sm:$0xff] %vm772_vm7, %v2565_v43 }
 0x196 PF: > { %s11_s8 = sadd.s32 1, %s3325_s8   ;;  %s3671_s6 = smov %s3321_s7 }
 0x197   : > { %p8_p5 = scmp.ge.s32.totalorder %s11_s8, 4   ;;  %s3672_s7 = smov %s3674_s9 }
 0x199   :  { %10 = sbr.rel (!%p8_p5) target bundleno = 2 (0x2), region = 57 }

</bundles_post_ra>
